<compile_context>
chip_gen: v7x
topology: tpu7x:2x2x1
jax: 0.10.0
libtpu: 0.0.40
codegen_flags: <defaults>
</compile_context>

<pallas_src>
import math

import jax
import jax.numpy as jnp
from jax.experimental import pallas as pl
from jax.experimental.pallas import tpu as pltpu

_SAFE_VMEM_BYTES = 48 << 20   # conservative residency target (v7x: 64 MiB physical)


def _round_up(n, m):
    return ((n + m - 1) // m) * m


def _vmem_limit(needed_bytes):
    # Real footprint + 25% margin, clamped to sane bounds.
    return int(min(max(needed_bytes + needed_bytes // 4 + (2 << 20), 32 << 20),
                   127 << 20))


# --------------------------------------------------------------------------- #
# Kernels
# --------------------------------------------------------------------------- #
def _metanet_kernel_fused(x_ref, w1_ref, b1_ref, w2_ref, b2_ref, o_ref):
    # fc1 (bf16 MXU, f32 acc) -> bias + ReLU in f32 -> fc2 (bf16 MXU, f32 acc).
    x = x_ref[...].astype(jnp.bfloat16)
    h = jnp.dot(x, w1_ref[...], preferred_element_type=jnp.float32)
    h = jnp.maximum(h + b1_ref[...], 0.0)
    y = jnp.dot(h.astype(jnp.bfloat16), w2_ref[...],
                preferred_element_type=jnp.float32)
    o_ref[...] = (y + b2_ref[...]).astype(o_ref.dtype)


def _metanet_kernel_htiled(x_ref, w1_ref, b1_ref, w2_ref, b2_ref, o_ref, acc_ref):
    # Hidden-dim tiled variant: grid axis 1 walks dh in tk chunks; partial fc2
    # products accumulate into an f32 VMEM scratch; output stored on last step.
    k = pl.program_id(1)

    @pl.when(k == 0)
    def _():
        acc_ref[...] = jnp.zeros_like(acc_ref)

    x = x_ref[...].astype(jnp.bfloat16)
    h = jnp.dot(x, w1_ref[...], preferred_element_type=jnp.float32)
    h = jnp.maximum(h + b1_ref[...], 0.0)
    acc_ref[...] += jnp.dot(h.astype(jnp.bfloat16), w2_ref[...],
                            preferred_element_type=jnp.float32)

    @pl.when(k == pl.num_programs(1) - 1)
    def _():
        o_ref[...] = (acc_ref[...] + b2_ref[...]).astype(o_ref.dtype)


# --------------------------------------------------------------------------- #
# Parameter packing (hoisted out of the forward pass -- do this ONCE)
# --------------------------------------------------------------------------- #
def pack_metanet_params(w1, b1, w2, b2):
    """Pad hidden/output feature dims to 128 lanes and cast weights to bf16.

    W1's K (first) dim is intentionally left unpadded so it matches x's last
    dim directly (x is passed to the kernel uncast and unpadded).
    """
    in_dim, hid_dim = w1.shape
    out_dim = w2.shape[1]
    dh = _round_up(hid_dim, 128)
    do = _round_up(out_dim, 128)
    w1p = jnp.zeros((in_dim, dh), jnp.bfloat16).at[:, :hid_dim].set(
        w1.astype(jnp.bfloat16))
    b1p = jnp.zeros((1, dh), jnp.float32).at[:, :hid_dim].set(
        b1.reshape(1, -1).astype(jnp.float32))
    w2p = jnp.zeros((dh, do), jnp.bfloat16).at[:hid_dim, :out_dim].set(
        w2.astype(jnp.bfloat16))
    b2p = jnp.zeros((1, do), jnp.float32).at[:, :out_dim].set(
        b2.reshape(1, -1).astype(jnp.float32))
    return dict(w1=w1p, b1=b1p, w2=w2p, b2=b2p,
                in_dim=in_dim, hid_dim=hid_dim, out_dim=out_dim)


def _pick_tk(dh, in_dim, do, target_bytes=8 << 20):
    """Largest 128-multiple divisor of dh whose double-buffered bf16 W1/W2
    column/row slices fit in ~target_bytes."""
    tk = dh
    while tk >= 128:
        if dh % tk == 0 and 2 * 2 * (in_dim * tk + tk * do) <= target_bytes:
            return tk
        tk -= 128
    return 128


# --------------------------------------------------------------------------- #
# Forward
# --------------------------------------------------------------------------- #
def metanet_forward(x, packed, *, block_rows=1024, force_hidden_tiling=False,
                    hidden_block=None):
    """Fused MetaNet forward. x: (..., in_dim); returns (..., out_dim)."""
    w1p, b1p, w2p, b2p = packed["w1"], packed["b1"], packed["w2"], packed["b2"]
    in_dim, out_dim = packed["in_dim"], packed["out_dim"]
    dh, do = w1p.shape[1], w2p.shape[1]
    assert x.shape[-1] == in_dim

    lead_shape = x.shape[:-1]
    x2 = x.reshape(-1, in_dim)
    B = x2.shape[0]
    out_dtype = x.dtype
    x_it = x2.dtype.itemsize
    o_it = jnp.dtype(out_dtype).itemsize

    # Batch tile: >=2 tiles when B > 8 (shards the "parallel" axis across
    # v7x's 2 TensorCores); sized so the final partial tile wastes at most one
    # sublane group.  No row padding -- Pallas masks the edge tile.
    n_tiles = max(pl.cdiv(B, block_rows), 2 if B > 8 else 1)
    tm = min(_round_up(pl.cdiv(B, n_tiles), 8), _round_up(B, 8))

    weight_bf16_bytes = (in_dim * dh + dh * do) * 2
    use_htiled = force_hidden_tiling or weight_bf16_bytes > (24 << 20)

    flops = 2 * B * (in_dim * dh + dh * do)
    bytes_accessed = (x2.size * x_it + weight_bf16_bytes + (dh + do) * 4
                      + B * do * o_it)

    if not use_htiled:
        resident_bytes = weight_bf16_bytes + (dh + do) * 4

        def needed(tm_, w_bufs):
            return (2 * tm_ * in_dim * x_it                 # x double-buffer
                    + 2 * tm_ * do * o_it                   # out double-buffer
                    + w_bufs * resident_bytes               # resident weights
                    + tm_ * (dh * 6 + do * 4                # h f32+bf16, y f32
                             + _round_up(in_dim, 128) * 2))  # x bf16 temp

        while tm > 8 and needed(tm, 1) > _SAFE_VMEM_BYTES:
            tm = _round_up(max(tm // 2, 8), 8)

        grid = (pl.cdiv(B, tm),)

        def call(single_buffer_weights):
            wmode = ({"pipeline_mode": pl.Buffered(1)}
                     if single_buffer_weights else {})
            return pl.pallas_call(
                _metanet_kernel_fused,
                out_shape=jax.ShapeDtypeStruct((B, do), out_dtype),
                grid=grid,
                in_specs=[
                    pl.BlockSpec((tm, in_dim), lambda i: (i, 0)),         # x streamed
                    pl.BlockSpec((in_dim, dh), lambda i: (0, 0), **wmode),  # w1 resident
                    pl.BlockSpec((1, dh), lambda i: (0, 0), **wmode),       # b1 resident
                    pl.BlockSpec((dh, do), lambda i: (0, 0), **wmode),      # w2 resident
                    pl.BlockSpec((1, do), lambda i: (0, 0), **wmode),       # b2 resident
                ],
                out_specs=pl.BlockSpec((tm, do), lambda i: (i, 0)),
                compiler_params=pltpu.CompilerParams(
                    dimension_semantics=("parallel",),
                    vmem_limit_bytes=_vmem_limit(
                        needed(tm, 1 if single_buffer_weights else 2))),
                cost_estimate=pl.CostEstimate(
                    flops=flops, transcendentals=0,
                    bytes_accessed=bytes_accessed),
            )(x2, w1p, b1p, w2p, b2p)
    else:
        # Weights too large to keep fully resident (v7x: 64 MiB VMEM) -- walk
        # the hidden dim and accumulate fc2 partial products in f32 scratch.
        tk = hidden_block if hidden_block is not None else _pick_tk(dh, in_dim, do)
        assert tk % 128 == 0 and dh % tk == 0

        def needed(tm_, k_bufs):
            per_k = (in_dim * tk + tk * do) * 2 + tk * 4
            return (2 * tm_ * in_dim * x_it + 2 * tm_ * do * o_it
                    + k_bufs * per_k + 2 * do * 4
                    + tm_ * (tk * 6 + do * 4 + _round_up(in_dim, 128) * 2)
                    + tm_ * do * 4)                          # acc scratch

        while tm > 8 and needed(tm, 2) > _SAFE_VMEM_BYTES:
            tm = _round_up(max(tm // 2, 8), 8)

        grid = (pl.cdiv(B, tm), dh // tk)

        def call(single_buffer_weights):
            wmode = ({"pipeline_mode": pl.Buffered(1)}
                     if single_buffer_weights else {})
            return pl.pallas_call(
                _metanet_kernel_htiled,
                out_shape=jax.ShapeDtypeStruct((B, do), out_dtype),
                grid=grid,
                in_specs=[
                    pl.BlockSpec((tm, in_dim), lambda i, k: (i, 0)),
                    pl.BlockSpec((in_dim, tk), lambda i, k: (0, k)),
                    pl.BlockSpec((1, tk), lambda i, k: (0, k)),
                    pl.BlockSpec((tk, do), lambda i, k: (k, 0)),
                    pl.BlockSpec((1, do), lambda i, k: (0, 0), **wmode),
                ],
                out_specs=pl.BlockSpec((tm, do), lambda i, k: (i, 0)),
                scratch_shapes=[pltpu.VMEM((tm, do), jnp.float32)],
                compiler_params=pltpu.CompilerParams(
                    dimension_semantics=("parallel", "arbitrary"),
                    vmem_limit_bytes=_vmem_limit(needed(tm, 2))),
                cost_estimate=pl.CostEstimate(
                    flops=flops, transcendentals=0,
                    bytes_accessed=bytes_accessed),
            )(x2, w1p, b1p, w2p, b2p)

    try:
        out_padded = call(True)
    except Exception:
        # pipeline_mode=pl.Buffered(1) unsupported on this jax build; fall back
        # to default double-buffered resident operands (correctness identical).
        out_padded = call(False)

    out = out_padded if out_dim == do else out_padded[:, :out_dim]
    return out.reshape(*lead_shape, out_dim)


# --------------------------------------------------------------------------- #
# Init + references
# --------------------------------------------------------------------------- #
def init_metanet_params(key, input_dim, hidden_dim, output_dim, dtype=jnp.float32):
    # nn.init.kaiming_uniform_(w, a=sqrt(5)) -> bound = 1/sqrt(fan_in);
    # biases zero-initialized (as in the reference module).
    k1, k2 = jax.random.split(key)
    bound1 = 1.0 / math.sqrt(input_dim)
    bound2 = 1.0 / math.sqrt(hidden_dim)
    # Stored as (in_dim, out_dim) -- transpose of PyTorch's (out, in) layout.
    w1 = jax.random.uniform(k1, (input_dim, hidden_dim), dtype,
                            minval=-bound1, maxval=bound1)
    b1 = jnp.zeros((hidden_dim,), dtype)
    w2 = jax.random.uniform(k2, (hidden_dim, output_dim), dtype,
                            minval=-bound2, maxval=bound2)
    b2 = jnp.zeros((output_dim,), dtype)
    return w1, b1, w2, b2


def _reference_bf16(x, w1, b1, w2, b2):
    # Pure-JAX reference matching the kernel's numerics (bf16 operands,
    # f32 accumulation, f32 epilogue).
    f32 = jnp.float32
    xb = x.astype(jnp.bfloat16).astype(f32)
    w1b = w1.astype(jnp.bfloat16).astype(f32)
    w2b = w2.astype(jnp.bfloat16).astype(f32)
    h = jnp.maximum(xb @ w1b + b1.reshape(1, -1).astype(f32), 0.0)
    hb = h.astype(jnp.bfloat16).astype(f32)
    return hb @ w2b + b2.reshape(1, -1).astype(f32)


if __name__ == "__main__":
    key = jax.random.PRNGKey(0)
    kx1, kx2, kx3, kp1, kp2 = jax.random.split(key, 5)

    # Case 1: single-tile fused path (weights fully resident).
    B, in_dim, hid_dim, out_dim = 8, 32, 64, 16
    x = jax.random.normal(kx1, (B, in_dim), jnp.float32)
    params = init_metanet_params(kp1, in_dim, hid_dim, out_dim)
    packed = pack_metanet_params(*params)            # packed ONCE, reused below
    out = metanet_forward(x, packed)
    jax.block_until_ready(out)
    ref = _reference_bf16(x, *params)
    assert out.shape == (B, out_dim)
    assert jnp.allclose(out, ref, atol=2e-3, rtol=2e-3)
    ref_f32 = jnp.maximum(x @ params[0] + params[1], 0.0) @ params[2] + params[3]
    assert jnp.allclose(out, ref_f32, atol=1e-1, rtol=1e-1)

    # Case 2: multi row-tile grid with a masked partial last tile, 3-D input.
    x2 = jax.random.normal(kx2, (2, 10, in_dim), jnp.float32)   # 20 rows, tm=8
    out2 = metanet_forward(x2, packed, block_rows=8)
    jax.block_until_ready(out2)
    ref2 = _reference_bf16(x2.reshape(-1, in_dim), *params)
    assert out2.shape == (2, 10, out_dim)
    assert jnp.allclose(out2.reshape(-1, out_dim), ref2, atol=2e-3, rtol=2e-3)

    # Case 3: hidden-dim (K) tiled fallback path (for weights > VMEM budget).
    in3, hid3, out3, B3 = 32, 256, 16, 16
    params3 = init_metanet_params(kp2, in3, hid3, out3)
    packed3 = pack_metanet_params(*params3)
    x3 = jax.random.normal(kx3, (B3, in3), jnp.float32)
    out3v = metanet_forward(x3, packed3, force_hidden_tiling=True, hidden_block=128)
    jax.block_until_ready(out3v)
    ref3 = _reference_bf16(x3, *params3)
    assert out3v.shape == (B3, out3)
    assert jnp.allclose(out3v, ref3, atol=2e-3, rtol=2e-3)

    print("KERNEL_OK")
</pallas_src>

<mosaic_0001>
module attributes {stable_mosaic.version = 11 : i64} {
  func.func @_metanet_kernel_fused(%arg0: i32, %arg1: memref<8x32xf32, #tpu.memory_space<vmem>>, %arg2: memref<32x128xbf16, #tpu.memory_space<vmem>>, %arg3: memref<1x128xf32, #tpu.memory_space<vmem>>, %arg4: memref<128x128xbf16, #tpu.memory_space<vmem>>, %arg5: memref<1x128xf32, #tpu.memory_space<vmem>>, %arg6: memref<8x128xf32, #tpu.memory_space<vmem>>) attributes {dimension_semantics = [#tpu.dimension_semantics<parallel>], iteration_bounds = array<i64: 1>, scalar_prefetch = 0 : i64, scratch_operands = 0 : i64, tpu.core_type = #tpu.core_type<tc>, window_params = [{transform_indices = @transform_0, window_bounds = array<i64: 8, 32>}, {pipeline_mode = #tpu.pipeline_mode<synchronous>, transform_indices = @transform_1, window_bounds = array<i64: 32, 128>}, {pipeline_mode = #tpu.pipeline_mode<synchronous>, transform_indices = @transform_2, window_bounds = array<i64: 1, 128>}, {pipeline_mode = #tpu.pipeline_mode<synchronous>, transform_indices = @transform_3, window_bounds = array<i64: 128, 128>}, {pipeline_mode = #tpu.pipeline_mode<synchronous>, transform_indices = @transform_4, window_bounds = array<i64: 1, 128>}, {transform_indices = @transform_5, window_bounds = array<i64: 8, 128>}]} {
    %c0 = arith.constant 0 : index
    %c0_0 = arith.constant 0 : index
    %0 = vector.load %arg1[%c0, %c0_0] : memref<8x32xf32, #tpu.memory_space<vmem>>, vector<8x32xf32>
    %1 = arith.truncf %0 : vector<8x32xf32> to vector<8x32xbf16>
    %c0_1 = arith.constant 0 : index
    %c0_2 = arith.constant 0 : index
    %2 = vector.load %arg2[%c0_1, %c0_2] : memref<32x128xbf16, #tpu.memory_space<vmem>>, vector<32x128xbf16>
    %cst = arith.constant dense<0.000000e+00> : vector<8x128xf32>
    %3 = tpu.matmul %1, %2, %cst {dimension_numbers = #tpu.dot_dimension_numbers<[1], [0], [0], [1], [0, 0, 1, 1], [], []>} : vector<8x32xbf16>, vector<32x128xbf16>, vector<8x128xf32> -> vector<8x128xf32>
    %c0_3 = arith.constant 0 : index
    %c0_4 = arith.constant 0 : index
    %4 = vector.load %arg3[%c0_3, %c0_4] : memref<1x128xf32, #tpu.memory_space<vmem>>, vector<1x128xf32>
    %5 = vector.broadcast %4 : vector<1x128xf32> to vector<8x128xf32>
    %6 = arith.addf %3, %5 : vector<8x128xf32>
    %cst_5 = arith.constant 0.000000e+00 : f32
    %7 = vector.broadcast %cst_5 : f32 to vector<8x128xf32>
    %8 = arith.maximumf %6, %7 : vector<8x128xf32>
    %9 = arith.truncf %8 : vector<8x128xf32> to vector<8x128xbf16>
    %c0_6 = arith.constant 0 : index
    %c0_7 = arith.constant 0 : index
    %10 = vector.load %arg4[%c0_6, %c0_7] : memref<128x128xbf16, #tpu.memory_space<vmem>>, vector<128x128xbf16>
    %cst_8 = arith.constant dense<0.000000e+00> : vector<8x128xf32>
    %11 = tpu.matmul %9, %10, %cst_8 {dimension_numbers = #tpu.dot_dimension_numbers<[1], [0], [0], [1], [0, 0, 1, 1], [], []>} : vector<8x128xbf16>, vector<128x128xbf16>, vector<8x128xf32> -> vector<8x128xf32>
    %c0_9 = arith.constant 0 : index
    %c0_10 = arith.constant 0 : index
    %12 = vector.load %arg5[%c0_9, %c0_10] : memref<1x128xf32, #tpu.memory_space<vmem>>, vector<1x128xf32>
    %13 = vector.broadcast %12 : vector<1x128xf32> to vector<8x128xf32>
    %14 = arith.addf %11, %13 : vector<8x128xf32>
    %c0_11 = arith.constant 0 : index
    %c0_12 = arith.constant 0 : index
    %15 = vector.load %arg6[%c0_11, %c0_12] : memref<8x128xf32, #tpu.memory_space<vmem>>, vector<8x128xf32>
    tpu.vector_store %arg6[%c0_11, %c0_12], %14 {strides = array<i32>} : memref<8x128xf32, #tpu.memory_space<vmem>>, vector<8x128xf32>,
    return
  }
  func.func @transform_0(%arg0: i32) -> (i32, i32) {
    %c0_i32 = arith.constant 0 : i32
    %c0_i32_0 = arith.constant 0 : i32
    return %arg0, %c0_i32 : i32, i32
  }
  func.func @transform_1(%arg0: i32) -> (i32, i32) {
    %c0_i32 = arith.constant 0 : i32
    %c0_i32_0 = arith.constant 0 : i32
    %c0_i32_1 = arith.constant 0 : i32
    return %c0_i32, %c0_i32_0 : i32, i32
  }
  func.func @transform_2(%arg0: i32) -> (i32, i32) {
    %c0_i32 = arith.constant 0 : i32
    %c0_i32_0 = arith.constant 0 : i32
    %c0_i32_1 = arith.constant 0 : i32
    return %c0_i32, %c0_i32_0 : i32, i32
  }
  func.func @transform_3(%arg0: i32) -> (i32, i32) {
    %c0_i32 = arith.constant 0 : i32
    %c0_i32_0 = arith.constant 0 : i32
    %c0_i32_1 = arith.constant 0 : i32
    return %c0_i32, %c0_i32_0 : i32, i32
  }
  func.func @transform_4(%arg0: i32) -> (i32, i32) {
    %c0_i32 = arith.constant 0 : i32
    %c0_i32_0 = arith.constant 0 : i32
    %c0_i32_1 = arith.constant 0 : i32
    return %c0_i32, %c0_i32_0 : i32, i32
  }
  func.func @transform_5(%arg0: i32) -> (i32, i32) {
    %c0_i32 = arith.constant 0 : i32
    %c0_i32_0 = arith.constant 0 : i32
    return %arg0, %c0_i32 : i32, i32
  }
}

module attributes {stable_mosaic.version = 11 : i64} {
  func.func @_metanet_kernel_fused(%arg0: i32, %arg1: memref<8x32xf32, #tpu.memory_space<vmem>>, %arg2: memref<32x128xbf16, #tpu.memory_space<vmem>>, %arg3: memref<1x128xf32, #tpu.memory_space<vmem>>, %arg4: memref<128x128xbf16, #tpu.memory_space<vmem>>, %arg5: memref<1x128xf32, #tpu.memory_space<vmem>>, %arg6: memref<8x128xf32, #tpu.memory_space<vmem>>) attributes {dimension_semantics = [#tpu.dimension_semantics<parallel>], iteration_bounds = array<i64: 1>, scalar_prefetch = 0 : i64, scratch_operands = 0 : i64, tpu.core_type = #tpu.core_type<tc>, window_params = [{transform_indices = @transform_0, window_bounds = array<i64: 8, 32>}, {pipeline_mode = #tpu.pipeline_mode<synchronous>, transform_indices = @transform_1, window_bounds = array<i64: 32, 128>}, {pipeline_mode = #tpu.pipeline_mode<synchronous>, transform_indices = @transform_2, window_bounds = array<i64: 1, 128>}, {pipeline_mode = #tpu.pipeline_mode<synchronous>, transform_indices = @transform_3, window_bounds = array<i64: 128, 128>}, {pipeline_mode = #tpu.pipeline_mode<synchronous>, transform_indices = @transform_4, window_bounds = array<i64: 1, 128>}, {transform_indices = @transform_5, window_bounds = array<i64: 8, 128>}]} {
    %c0 = arith.constant 0 : index
    %c0_0 = arith.constant 0 : index
    %0 = vector.load %arg1[%c0, %c0_0] : memref<8x32xf32, #tpu.memory_space<vmem>>, vector<8x32xf32>
    %1 = arith.truncf %0 : vector<8x32xf32> to vector<8x32xbf16>
    %c0_1 = arith.constant 0 : index
    %c0_2 = arith.constant 0 : index
    %2 = vector.load %arg2[%c0_1, %c0_2] : memref<32x128xbf16, #tpu.memory_space<vmem>>, vector<32x128xbf16>
    %cst = arith.constant dense<0.000000e+00> : vector<8x128xf32>
    %3 = tpu.matmul %1, %2, %cst {dimension_numbers = #tpu.dot_dimension_numbers<[1], [0], [0], [1], [0, 0, 1, 1], [], []>} : vector<8x32xbf16>, vector<32x128xbf16>, vector<8x128xf32> -> vector<8x128xf32>
    %c0_3 = arith.constant 0 : index
    %c0_4 = arith.constant 0 : index
    %4 = vector.load %arg3[%c0_3, %c0_4] : memref<1x128xf32, #tpu.memory_space<vmem>>, vector<1x128xf32>
    %5 = vector.broadcast %4 : vector<1x128xf32> to vector<8x128xf32>
    %6 = arith.addf %3, %5 : vector<8x128xf32>
    %cst_5 = arith.constant 0.000000e+00 : f32
    %7 = vector.broadcast %cst_5 : f32 to vector<8x128xf32>
    %8 = arith.maximumf %6, %7 : vector<8x128xf32>
    %9 = arith.truncf %8 : vector<8x128xf32> to vector<8x128xbf16>
    %c0_6 = arith.constant 0 : index
    %c0_7 = arith.constant 0 : index
    %10 = vector.load %arg4[%c0_6, %c0_7] : memref<128x128xbf16, #tpu.memory_space<vmem>>, vector<128x128xbf16>
    %cst_8 = arith.constant dense<0.000000e+00> : vector<8x128xf32>
    %11 = tpu.matmul %9, %10, %cst_8 {dimension_numbers = #tpu.dot_dimension_numbers<[1], [0], [0], [1], [0, 0, 1, 1], [], []>} : vector<8x128xbf16>, vector<128x128xbf16>, vector<8x128xf32> -> vector<8x128xf32>
    %c0_9 = arith.constant 0 : index
    %c0_10 = arith.constant 0 : index
    %12 = vector.load %arg5[%c0_9, %c0_10] : memref<1x128xf32, #tpu.memory_space<vmem>>, vector<1x128xf32>
    %13 = vector.broadcast %12 : vector<1x128xf32> to vector<8x128xf32>
    %14 = arith.addf %11, %13 : vector<8x128xf32>
    %c0_11 = arith.constant 0 : index
    %c0_12 = arith.constant 0 : index
    %15 = vector.load %arg6[%c0_11, %c0_12] : memref<8x128xf32, #tpu.memory_space<vmem>>, vector<8x128xf32>
    tpu.vector_store %arg6[%c0_11, %c0_12], %14 {strides = array<i32>} : memref<8x128xf32, #tpu.memory_space<vmem>>, vector<8x128xf32>,
    return
  }
  func.func @transform_0(%arg0: i32) -> (i32, i32) {
    %c0_i32 = arith.constant 0 : i32
    %c0_i32_0 = arith.constant 0 : i32
    return %arg0, %c0_i32 : i32, i32
  }
  func.func @transform_1(%arg0: i32) -> (i32, i32) {
    %c0_i32 = arith.constant 0 : i32
    %c0_i32_0 = arith.constant 0 : i32
    %c0_i32_1 = arith.constant 0 : i32
    return %c0_i32, %c0_i32_0 : i32, i32
  }
  func.func @transform_2(%arg0: i32) -> (i32, i32) {
    %c0_i32 = arith.constant 0 : i32
    %c0_i32_0 = arith.constant 0 : i32
    %c0_i32_1 = arith.constant 0 : i32
    return %c0_i32, %c0_i32_0 : i32, i32
  }
  func.func @transform_3(%arg0: i32) -> (i32, i32) {
    %c0_i32 = arith.constant 0 : i32
    %c0_i32_0 = arith.constant 0 : i32
    %c0_i32_1 = arith.constant 0 : i32
    return %c0_i32, %c0_i32_0 : i32, i32
  }
  func.func @transform_4(%arg0: i32) -> (i32, i32) {
    %c0_i32 = arith.constant 0 : i32
    %c0_i32_0 = arith.constant 0 : i32
    %c0_i32_1 = arith.constant 0 : i32
    return %c0_i32, %c0_i32_0 : i32, i32
  }
  func.func @transform_5(%arg0: i32) -> (i32, i32) {
    %c0_i32 = arith.constant 0 : i32
    %c0_i32_0 = arith.constant 0 : i32
    return %arg0, %c0_i32 : i32, i32
  }
}

</mosaic_0001>

<bundles_post_ra>
// kernel: tpu_custom_call.1
= control target key start
LH: loop header
LB: loop body
LE: loop exit
PB: predicated region body
PF: predicated region fallthrough
CT: control target
= control target key end

     0   :  { %10 = vsyncpa [#allocation3], 0  ;;  %s523_s0 = inlined_call_operand.hbm [shape: f32[8,32], index: 0, kind: input, shape index: {}]   ;;  %s524_s1 = inlined_call_operand.hbm [shape: bf16[32,128], index: 1, kind: input, shape index: {}]   ;;  %s525_s2 = inlined_call_operand.vmem [shape: f32[1,128], index: 2, kind: input, shape index: {}]   ;;  %s526_s3 = inlined_call_operand.hbm [shape: bf16[128,128], index: 3, kind: input, shape index: {}]   ;;  %s527_s4 = inlined_call_operand.vmem [shape: f32[1,128], index: 4, kind: input, shape index: {}]   ;;  %s528_s5 = inlined_call_operand.hbm [shape: f32[8,128], index: 5, kind: output, shape index: {}]  }
   0x1   :  { %11 = vsyncpa [#allocation6], 0 }
   0x2   :  { %12 = vsyncpa [#allocation4], 0  ;;  %s425_s18 = smov [#allocation5]   ;;  %s331_s22 = scalar_lea.hbm %s524_s1, 256 }
   0x3   :  { %s28_s19 = sshll.u32 %s425_s18, 4  ;;  %p332_p0 = scmp.ne.s32.totalorder %s524_s1, %s331_s22  ;;  %s29_s19 = int_to_ptr.vmem [resolvable:$true] %s28_s19 }
   0x4   :  { %p335_p1 = scmp.lt.u32.totalorder %s331_s22, %s524_s1 }
   0x6   :  { %p337_p2 = pnand %p335_p1, %p332_p0 }
   0x8   :  { %340 = shalt.err (!%p337_p2)
}
   0x9   :  { %s341_s27 = scalar_lea.vmem %s29_s19, 256  ;;  %p346_p4 = scmp.lt.s32.totalorder %s29_s19, %s29_s19 }
   0xa   :  { %p342_p3 = scmp.ne.s32.totalorder %s29_s19, %s341_s27  ;;  %p347_p5 = scmp.lt.s32.totalorder %s341_s27, %s341_s27 }
   0xc   :  { %p348_p6 = por %p347_p5, %p346_p4 }
   0xe   :  { %p349_p7 = pnand %p348_p6, %p342_p3 }
  0x10   :  { %352 = shalt.err (!%p349_p7)
}
  0x11   :  { %s426_s28 = smov 64   ;;  %s427_s29 = smov 4  }
  0x12   :  { %34 = dma.hbm_to_vmem [thread:$0]  %s524_s1, 256, %s29_s19, [#allocation6], %s426_s28, %s426_s28, %s427_s29  }
  0x13   :  { %s428_s7 = smov [#allocation2]   ;;  %s429_s9 = smov [#allocation7]  }
  0x14   :  { %s19_s8 = sshll.u32 %s428_s7, 4  ;;  %s42_s10 = sshll.u32 %s429_s9, 4  ;;  %s20_s8 = int_to_ptr.vmem [resolvable:$true] %s19_s8  ;;  %s43_s10 = int_to_ptr.vmem [resolvable:$true] %s42_s10 }
  0x15   :  { %s353_s13 = scalar_lea.hbm %s523_s0, 128 }
  0x16   :  { %p354_p8 = scmp.ne.s32.totalorder %s523_s0, %s353_s13  ;;  %p357_p9 = scmp.lt.u32.totalorder %s353_s13, %s523_s0 }
  0x18   :  { %p359_p10 = pnand %p357_p9, %p354_p8 }
  0x1a   :  { %362 = shalt.err (!%p359_p10)
}
  0x1b   :  { %s363_s1 = scalar_lea.vmem %s20_s8, 128  ;;  %p368_p12 = scmp.lt.s32.totalorder %s20_s8, %s20_s8 }
  0x1c   :  { %p364_p11 = scmp.ne.s32.totalorder %s20_s8, %s363_s1  ;;  %p369_p13 = scmp.lt.s32.totalorder %s363_s1, %s363_s1 }
  0x1e   :  { %p370_p0 = por %p369_p13, %p368_p12 }
  0x20   :  { %p371_p1 = pnand %p370_p0, %p364_p11 }
  0x22   :  { %374 = shalt.err (!%p371_p1)
}
  0x23   :  { %22 = dma.hbm_to_vmem [thread:$0]  %s523_s0, 128, %s20_s8, [#allocation3]  }
  0x24   :  { %s375_s22 = scalar_lea.hbm %s526_s3, 1024 }
  0x25   :  { %p376_p2 = scmp.ne.s32.totalorder %s526_s3, %s375_s22  ;;  %p379_p3 = scmp.lt.u32.totalorder %s375_s22, %s526_s3 }
  0x27   :  { %p381_p4 = pnand %p379_p3, %p376_p2 }
  0x29   :  { %384 = shalt.err (!%p381_p4)
}
  0x2a   :  { %s385_s27 = scalar_lea.vmem %s43_s10, 1024  ;;  %p390_p6 = scmp.lt.s32.totalorder %s43_s10, %s43_s10 }
  0x2b   :  { %p386_p5 = scmp.ne.s32.totalorder %s43_s10, %s385_s27  ;;  %p391_p7 = scmp.lt.s32.totalorder %s385_s27, %s385_s27 }
  0x2d   :  { %p392_p8 = por %p391_p7, %p390_p6 }
  0x2f   :  { %p393_p9 = pnand %p392_p8, %p386_p5 }
  0x31   :  { %396 = shalt.err (!%p393_p9)
}
  0x32   :  { %48 = dma.hbm_to_vmem [thread:$0]  %s526_s3, 1024, %s43_s10, [#allocation6], %s426_s28, %s426_s28, %s427_s29  }
  0x33   :  { %419 = dma.done.wait [#allocation3], 128  }
  0x34   :  { %420 = vsyncadd [#allocation3], 4294967168 }
  0x35   :  { %421 = dma.done.wait [#allocation6], 1280  }
  0x36   :  { %422 = vsyncadd [#allocation6], 4294966016  ;;  %v430_v0 = vmov 0.0   ;;  %vm431_vm0 = vmmov 0   ;;  %v321_v1 = vld [vmem:[#allocation5] sm:$0xff]   ;;  %v322_v2 = vld [vmem:[#allocation5 + $0x8] sm:$0xff]  }
  0x37   :  { %285 = vmatprep.subr.bf16.mxu0 %v430_v0  ;;  %289 = vmatprep.mubr.msk.bf16.mxu0 %vm431_vm0, %v430_v0  ;;  %v61_v3 = vld [vmem:[#allocation2] sm:$0xff]  ;;  %v323_v4 = vld [vmem:[#allocation7] sm:$0xff]   ;;  %vm86_vm1 = vcmask 261120   ;;  %v325_v7 = vld [vmem:[#allocation7 + $0x10] sm:$0xff]   ;;  %s432_s7 = smov [#allocation8]  }
  0x38   :  { %293 = vmatprep.subr.bf16.mxu1 %v430_v0  ;;  %309 = vmatprep.mubr.msk.bf16.mxu1 %vm431_vm0, %v430_v0  ;;  %v62_v5 = vpack.c.bf16 %v61_v3, %v61_v3  ;;  %v324_v6 = vld [vmem:[#allocation7 + $0x8] sm:$0xff]   ;;  %v326_v8 = vld [vmem:[#allocation7 + $0x18] sm:$0xff]   ;;  %v327_v9 = vld [vmem:[#allocation7 + $0x20] sm:$0xff]   ;;  %s250_s8 = sshll.u32 %s432_s7, 4  ;;  %s251_s8 = int_to_ptr.vmem [resolvable:$true] %s250_s8 }
  0x39   :  { %286 = vmatpush3.bf16.msra.mxu0 %v321_v1  ;;  %294 = vmatpush3.bf16.msra.mxu1 %v323_v4  ;;  %v328_v10 = vld [vmem:[#allocation7 + $0x28] sm:$0xff]   ;;  %v329_v11 = vld [vmem:[#allocation7 + $0x30] sm:$0xff]   ;;  %v330_v12 = vld [vmem:[#allocation7 + $0x38] sm:$0xff]   ;;  %p402_p11 = scmp.lt.s32.totalorder %s251_s8, %s251_s8 }
  0x3a   :  { %287 = vmatprep.subr.bf16.mxu0 %v430_v0  ;;  %295 = vmatprep.subr.bf16.mxu1 %v430_v0  ;;  %v260_v13 = vld [vmem:[%s525_s2] ss:$0 sm:$0xff]  ;;  %s397_s2 = scalar_lea.vmem %s251_s8, 128 }
  0x3b   :  { %v264_v21 = vld [vmem:[%s527_s4] ss:$0 sm:$0xff]  ;;  %p398_p10 = scmp.ne.s32.totalorder %s251_s8, %s397_s2  ;;  %p403_p12 = scmp.lt.s32.totalorder %s397_s2, %s397_s2 }
  0x3d   :  { %288 = vmatpush3.bf16.msra.mxu0 %v322_v2  ;;  %296 = vmatpush3.bf16.msra.mxu1 %v324_v6  ;;  %p404_p13 = por %p403_p12, %p402_p11 }
  0x3e   :  { %297 = vmatprep.subr.bf16.mxu1 %v430_v0 }
  0x3f   :  { %p405_p0 = pnand %p404_p13, %p398_p10 }
  0x40   :  { %290 = vmatmul.mubr.msk.bf16.vlgmr.msra.gmra.mrb[0].mxu0 %vm86_vm1, %v62_v5 }
  0x41   :  { %298 = vmatpush3.bf16.msra.mxu1 %v325_v7 }
  0x42   :  { %299 = vmatprep.subr.bf16.mxu1 %v430_v0 }
  0x45   :  { %300 = vmatpush3.bf16.msra.mxu1 %v326_v8 }
  0x46   :  { %301 = vmatprep.subr.bf16.mxu1 %v430_v0 }
  0x49   :  { %302 = vmatpush3.bf16.msra.mxu1 %v327_v9 }
  0x4a   :  { %303 = vmatprep.subr.bf16.mxu1 %v430_v0 }
  0x4d   :  { %304 = vmatpush3.bf16.msra.mxu1 %v328_v10 }
  0x4e   :  { %305 = vmatprep.subr.bf16.mxu1 %v430_v0 }
  0x51   :  { %306 = vmatpush3.bf16.msra.mxu1 %v329_v11 }
  0x52   :  { %307 = vmatprep.subr.bf16.mxu1 %v430_v0 }
  0x55   :  { %308 = vmatpush3.bf16.msra.mxu1 %v330_v12 }
 0x113   :  { %v124_v14 = vpop.f32.mrb[0].mxu0 }
 0x114   :  { %v125_v15 = vadd.f32 %v260_v13, %v124_v14  ;;  %v291_v16 = vpop.f32.mrb[1].mxu0 }
 0x115   :  { %v127_v17 = vpop.f32.mrb[2].mxu0 }
 0x116   :  { %v130_v18 = vmax.f32 %v125_v15, 0.0  ;;  %v292_v19 = vpop.f32.mrb[3].mxu0 }
 0x118   :  { %v131_v20 = vpack.c.bf16 %v130_v18, %v130_v18 }
 0x11a   :  { %310 = vmatmul.mubr.bf16.vlgmr.msra.gmra.mrb[0].mxu1 %v131_v20 }
 0x1ed   :  { %v237_v22 = vpop.f32.mrb[0].mxu1 }
 0x1ee   :  { %v238_v23 = vadd.f32 %v264_v21, %v237_v22  ;;  %v311_v24 = vpop.f32.mrb[1].mxu1 }
 0x1ef   :  { %v240_v25 = vpop.f32.mrb[2].mxu1 }
 0x1f0   :  { %243 = vst [vmem:[#allocation8] sm:$0xff] %v238_v23  ;;  %v312_v26 = vpop.f32.mrb[3].mxu1 }
 0x1f1   :  { %408 = shalt.err (!%p405_p0)
}
 0x1f2   :  { %s409_s4 = scalar_lea.hbm %s528_s5, 128 }
 0x1f3   :  { %p410_p1 = scmp.ne.s32.totalorder %s528_s5, %s409_s4  ;;  %p413_p2 = scmp.lt.u32.totalorder %s409_s4, %s528_s5 }
 0x1f5   :  { %p415_p3 = pnand %p413_p2, %p410_p1 }
 0x1f7   :  { %418 = shalt.err (!%p415_p3)
}
 0x1f8   :  { %253 = dma.vmem_to_hbm [thread:$0]  %s251_s8, 128, %s528_s5, [#allocation4]  }
 0x1f9   :  { %423 = dma.done.wait [#allocation4], 128  }
 0x1fa   :  { %424 = vsyncadd [#allocation4], 4294967168 }
 0x1fb   :  { %257 = vsyncpa [#allocation3], 1 }
 0x1fc   :  { %258 = vsyncpa [#allocation6], 1 }
 0x1fd   :  { %259 = vsyncpa [#allocation4], 1 }

// kernel: tpu_custom_call.1
= control target key start
LH: loop header
LB: loop body
LE: loop exit
PB: predicated region body
PF: predicated region fallthrough
CT: control target
= control target key end

     0   :  { %10 = vsyncpa [#allocation3], 0  ;;  %s523_s0 = inlined_call_operand.hbm [shape: f32[8,32], index: 0, kind: input, shape index: {}]   ;;  %s524_s1 = inlined_call_operand.hbm [shape: bf16[32,128], index: 1, kind: input, shape index: {}]   ;;  %s525_s2 = inlined_call_operand.vmem [shape: f32[1,128], index: 2, kind: input, shape index: {}]   ;;  %s526_s3 = inlined_call_operand.hbm [shape: bf16[128,128], index: 3, kind: input, shape index: {}]   ;;  %s527_s4 = inlined_call_operand.vmem [shape: f32[1,128], index: 4, kind: input, shape index: {}]   ;;  %s528_s5 = inlined_call_operand.hbm [shape: f32[8,128], index: 5, kind: output, shape index: {}]  }
   0x1   :  { %11 = vsyncpa [#allocation6], 0 }
   0x2   :  { %12 = vsyncpa [#allocation4], 0  ;;  %s425_s18 = smov [#allocation5]   ;;  %s331_s22 = scalar_lea.hbm %s524_s1, 256 }
   0x3   :  { %s28_s19 = sshll.u32 %s425_s18, 4  ;;  %p332_p0 = scmp.ne.s32.totalorder %s524_s1, %s331_s22  ;;  %s29_s19 = int_to_ptr.vmem [resolvable:$true] %s28_s19 }
   0x4   :  { %p335_p1 = scmp.lt.u32.totalorder %s331_s22, %s524_s1 }
   0x6   :  { %p337_p2 = pnand %p335_p1, %p332_p0 }
   0x8   :  { %340 = shalt.err (!%p337_p2)
}
   0x9   :  { %s341_s27 = scalar_lea.vmem %s29_s19, 256  ;;  %p346_p4 = scmp.lt.s32.totalorder %s29_s19, %s29_s19 }
   0xa   :  { %p342_p3 = scmp.ne.s32.totalorder %s29_s19, %s341_s27  ;;  %p347_p5 = scmp.lt.s32.totalorder %s341_s27, %s341_s27 }
   0xc   :  { %p348_p6 = por %p347_p5, %p346_p4 }
   0xe   :  { %p349_p7 = pnand %p348_p6, %p342_p3 }
  0x10   :  { %352 = shalt.err (!%p349_p7)
}
  0x11   :  { %s426_s28 = smov 64   ;;  %s427_s29 = smov 4  }
  0x12   :  { %34 = dma.hbm_to_vmem [thread:$0]  %s524_s1, 256, %s29_s19, [#allocation6], %s426_s28, %s426_s28, %s427_s29  }
  0x13   :  { %s428_s7 = smov [#allocation2]   ;;  %s429_s9 = smov [#allocation7]  }
  0x14   :  { %s19_s8 = sshll.u32 %s428_s7, 4  ;;  %s42_s10 = sshll.u32 %s429_s9, 4  ;;  %s20_s8 = int_to_ptr.vmem [resolvable:$true] %s19_s8  ;;  %s43_s10 = int_to_ptr.vmem [resolvable:$true] %s42_s10 }
  0x15   :  { %s353_s13 = scalar_lea.hbm %s523_s0, 128 }
  0x16   :  { %p354_p8 = scmp.ne.s32.totalorder %s523_s0, %s353_s13  ;;  %p357_p9 = scmp.lt.u32.totalorder %s353_s13, %s523_s0 }
  0x18   :  { %p359_p10 = pnand %p357_p9, %p354_p8 }
  0x1a   :  { %362 = shalt.err (!%p359_p10)
}
  0x1b   :  { %s363_s1 = scalar_lea.vmem %s20_s8, 128  ;;  %p368_p12 = scmp.lt.s32.totalorder %s20_s8, %s20_s8 }
  0x1c   :  { %p364_p11 = scmp.ne.s32.totalorder %s20_s8, %s363_s1  ;;  %p369_p13 = scmp.lt.s32.totalorder %s363_s1, %s363_s1 }
  0x1e   :  { %p370_p0 = por %p369_p13, %p368_p12 }
  0x20   :  { %p371_p1 = pnand %p370_p0, %p364_p11 }
  0x22   :  { %374 = shalt.err (!%p371_p1)
}
  0x23   :  { %22 = dma.hbm_to_vmem [thread:$0]  %s523_s0, 128, %s20_s8, [#allocation3]  }
  0x24   :  { %s375_s22 = scalar_lea.hbm %s526_s3, 1024 }
  0x25   :  { %p376_p2 = scmp.ne.s32.totalorder %s526_s3, %s375_s22  ;;  %p379_p3 = scmp.lt.u32.totalorder %s375_s22, %s526_s3 }
  0x27   :  { %p381_p4 = pnand %p379_p3, %p376_p2 }
  0x29   :  { %384 = shalt.err (!%p381_p4)
}
  0x2a   :  { %s385_s27 = scalar_lea.vmem %s43_s10, 1024  ;;  %p390_p6 = scmp.lt.s32.totalorder %s43_s10, %s43_s10 }
  0x2b   :  { %p386_p5 = scmp.ne.s32.totalorder %s43_s10, %s385_s27  ;;  %p391_p7 = scmp.lt.s32.totalorder %s385_s27, %s385_s27 }
  0x2d   :  { %p392_p8 = por %p391_p7, %p390_p6 }
  0x2f   :  { %p393_p9 = pnand %p392_p8, %p386_p5 }
  0x31   :  { %396 = shalt.err (!%p393_p9)
}
  0x32   :  { %48 = dma.hbm_to_vmem [thread:$0]  %s526_s3, 1024, %s43_s10, [#allocation6], %s426_s28, %s426_s28, %s427_s29  }
  0x33   :  { %419 = dma.done.wait [#allocation3], 128  }
  0x34   :  { %420 = vsyncadd [#allocation3], 4294967168 }
  0x35   :  { %421 = dma.done.wait [#allocation6], 1280  }
  0x36   :  { %422 = vsyncadd [#allocation6], 4294966016  ;;  %v430_v0 = vmov 0.0   ;;  %vm431_vm0 = vmmov 0   ;;  %v321_v1 = vld [vmem:[#allocation5] sm:$0xff]   ;;  %v322_v2 = vld [vmem:[#allocation5 + $0x8] sm:$0xff]  }
  0x37   :  { %285 = vmatprep.subr.bf16.mxu0 %v430_v0  ;;  %289 = vmatprep.mubr.msk.bf16.mxu0 %vm431_vm0, %v430_v0  ;;  %v61_v3 = vld [vmem:[#allocation2] sm:$0xff]  ;;  %v323_v4 = vld [vmem:[#allocation7] sm:$0xff]   ;;  %vm86_vm1 = vcmask 261120   ;;  %v325_v7 = vld [vmem:[#allocation7 + $0x10] sm:$0xff]   ;;  %s432_s7 = smov [#allocation8]  }
  0x38   :  { %293 = vmatprep.subr.bf16.mxu1 %v430_v0  ;;  %309 = vmatprep.mubr.msk.bf16.mxu1 %vm431_vm0, %v430_v0  ;;  %v62_v5 = vpack.c.bf16 %v61_v3, %v61_v3  ;;  %v324_v6 = vld [vmem:[#allocation7 + $0x8] sm:$0xff]   ;;  %v326_v8 = vld [vmem:[#allocation7 + $0x18] sm:$0xff]   ;;  %v327_v9 = vld [vmem:[#allocation7 + $0x20] sm:$0xff]   ;;  %s250_s8 = sshll.u32 %s432_s7, 4  ;;  %s251_s8 = int_to_ptr.vmem [resolvable:$true] %s250_s8 }
  0x39   :  { %286 = vmatpush3.bf16.msra.mxu0 %v321_v1  ;;  %294 = vmatpush3.bf16.msra.mxu1 %v323_v4  ;;  %v328_v10 = vld [vmem:[#allocation7 + $0x28] sm:$0xff]   ;;  %v329_v11 = vld [vmem:[#allocation7 + $0x30] sm:$0xff]   ;;  %v330_v12 = vld [vmem:[#allocation7 + $0x38] sm:$0xff]   ;;  %p402_p11 = scmp.lt.s32.totalorder %s251_s8, %s251_s8 }
  0x3a   :  { %287 = vmatprep.subr.bf16.mxu0 %v430_v0  ;;  %295 = vmatprep.subr.bf16.mxu1 %v430_v0  ;;  %v260_v13 = vld [vmem:[%s525_s2] ss:$0 sm:$0xff]  ;;  %s397_s2 = scalar_lea.vmem %s251_s8, 128 }
  0x3b   :  { %v264_v21 = vld [vmem:[%s527_s4] ss:$0 sm:$0xff]  ;;  %p398_p10 = scmp.ne.s32.totalorder %s251_s8, %s397_s2  ;;  %p403_p12 = scmp.lt.s32.totalorder %s397_s2, %s397_s2 }
  0x3d   :  { %288 = vmatpush3.bf16.msra.mxu0 %v322_v2  ;;  %296 = vmatpush3.bf16.msra.mxu1 %v324_v6  ;;  %p404_p13 = por %p403_p12, %p402_p11 }
  0x3e   :  { %297 = vmatprep.subr.bf16.mxu1 %v430_v0 }
  0x3f   :  { %p405_p0 = pnand %p404_p13, %p398_p10 }
  0x40   :  { %290 = vmatmul.mubr.msk.bf16.vlgmr.msra.gmra.mrb[0].mxu0 %vm86_vm1, %v62_v5 }
  0x41   :  { %298 = vmatpush3.bf16.msra.mxu1 %v325_v7 }
  0x42   :  { %299 = vmatprep.subr.bf16.mxu1 %v430_v0 }
  0x45   :  { %300 = vmatpush3.bf16.msra.mxu1 %v326_v8 }
  0x46   :  { %301 = vmatprep.subr.bf16.mxu1 %v430_v0 }
  0x49   :  { %302 = vmatpush3.bf16.msra.mxu1 %v327_v9 }
  0x4a   :  { %303 = vmatprep.subr.bf16.mxu1 %v430_v0 }
  0x4d   :  { %304 = vmatpush3.bf16.msra.mxu1 %v328_v10 }
  0x4e   :  { %305 = vmatprep.subr.bf16.mxu1 %v430_v0 }
  0x51   :  { %306 = vmatpush3.bf16.msra.mxu1 %v329_v11 }
  0x52   :  { %307 = vmatprep.subr.bf16.mxu1 %v430_v0 }
  0x55   :  { %308 = vmatpush3.bf16.msra.mxu1 %v330_v12 }
 0x113   :  { %v124_v14 = vpop.f32.mrb[0].mxu0 }
 0x114   :  { %v125_v15 = vadd.f32 %v260_v13, %v124_v14  ;;  %v291_v16 = vpop.f32.mrb[1].mxu0 }
 0x115   :  { %v127_v17 = vpop.f32.mrb[2].mxu0 }
 0x116   :  { %v130_v18 = vmax.f32 %v125_v15, 0.0  ;;  %v292_v19 = vpop.f32.mrb[3].mxu0 }
 0x118   :  { %v131_v20 = vpack.c.bf16 %v130_v18, %v130_v18 }
 0x11a   :  { %310 = vmatmul.mubr.bf16.vlgmr.msra.gmra.mrb[0].mxu1 %v131_v20 }
 0x1ed   :  { %v237_v22 = vpop.f32.mrb[0].mxu1 }
 0x1ee   :  { %v238_v23 = vadd.f32 %v264_v21, %v237_v22  ;;  %v311_v24 = vpop.f32.mrb[1].mxu1 }
 0x1ef   :  { %v240_v25 = vpop.f32.mrb[2].mxu1 }
 0x1f0   :  { %243 = vst [vmem:[#allocation8] sm:$0xff] %v238_v23  ;;  %v312_v26 = vpop.f32.mrb[3].mxu1 }
 0x1f1   :  { %408 = shalt.err (!%p405_p0)
}
 0x1f2   :  { %s409_s4 = scalar_lea.hbm %s528_s5, 128 }
 0x1f3   :  { %p410_p1 = scmp.ne.s32.totalorder %s528_s5, %s409_s4  ;;  %p413_p2 = scmp.lt.u32.totalorder %s409_s4, %s528_s5 }
 0x1f5   :  { %p415_p3 = pnand %p413_p2, %p410_p1 }
 0x1f7   :  { %418 = shalt.err (!%p415_p3)
}
 0x1f8   :  { %253 = dma.vmem_to_hbm [thread:$0]  %s251_s8, 128, %s528_s5, [#allocation4]  }
 0x1f9   :  { %423 = dma.done.wait [#allocation4], 128  }
 0x1fa   :  { %424 = vsyncadd [#allocation4], 4294967168 }
 0x1fb   :  { %257 = vsyncpa [#allocation3], 1 }
 0x1fc   :  { %258 = vsyncpa [#allocation6], 1 }
 0x1fd   :  { %259 = vsyncpa [#allocation4], 1 }

</bundles_post_ra>
